<compile_context>
chip_gen: v5e
topology: v5e:2x2
jax: 0.10.0
libtpu: 0.0.40
codegen_flags: <defaults>
</compile_context>

<pallas_src>
import jax
import jax.numpy as jnp
from jax.experimental import pallas as pl
from jax.experimental.pallas import tpu as pltpu

NUM_CLASSES = 5
C_PAD = 128          # lane-dense padded class dimension for the MXU
NEG_INF = -1e30      # finite "-inf" so exp() cleanly underflows to 0


def _round_up(x, m):
    return (x + m - 1) // m * m


def _vmem_capacity_bytes():
    try:
        return int(pltpu.get_tpu_info().vmem_capacity_bytes)
    except Exception:
        return 64 * 1024 * 1024   # conservative default (v7x physical VMEM)


def _pick_tile(B, D):
    """Batch tile: as large as the per-generation VMEM budget allows, multiple of 8."""
    budget = int(_vmem_capacity_bytes() * 0.7)        # ~45 MiB v7x, ~90 MiB v5e/v6e
    weight_bytes = D * C_PAD * 2 + C_PAD * 4          # single-buffered bf16 W + f32 b
    # per-row cost: double-buffered bf16 x row + double-buffered output + f32 temporaries
    row_bytes = 2 * D * 2 + 2 * C_PAD * 4 + 4 * C_PAD * 4
    tb = (budget - weight_bytes) // row_bytes
    tb = max(8, min(2048, (tb // 8) * 8))
    # keep >= 2 grid steps when the batch allows it (v7x megacore needs >= 2 to use both TCs)
    tb = min(tb, max(8, _round_up((B + 1) // 2, 8)))
    return tb


def _resident_spec(shape):
    """Grid-invariant operand: constant index_map + single buffer (no wasted double buffer)."""
    idx = lambda i: (0,) * len(shape)
    try:
        return pl.BlockSpec(shape, idx, pipeline_mode=pl.Buffered(1))
    except TypeError:                         # older jax without pipeline_mode
        return pl.BlockSpec(shape, idx)


# ------------------------- kernels -------------------------

def _softmax_fwd_kernel(x_ref, wt_ref, b_ref, o_ref):
    # logits = x @ W_t + b ; W_t is (K=D, N=C_PAD) bf16, accumulation in f32 on the MXU.
    logits = jnp.dot(x_ref[...], wt_ref[...],
                     preferred_element_type=jnp.float32) + b_ref[...]
    col = jax.lax.broadcasted_iota(jnp.int32, logits.shape, 1)
    logits = jnp.where(col < NUM_CLASSES, logits, NEG_INF)   # mask padded classes
    m = jnp.max(logits, axis=1, keepdims=True)
    e = jnp.exp(logits - m)
    denom = jnp.sum(e, axis=1, keepdims=True)
    probs = e / denom                                        # exact: rows sum to 1
    o_ref[...] = probs[:, :NUM_CLASSES].astype(o_ref.dtype)  # (TB, 5) store


def _xent_loss_kernel(x_ref, wt_ref, b_ref, y_ref, o_ref):
    logits = jnp.dot(x_ref[...], wt_ref[...],
                     preferred_element_type=jnp.float32) + b_ref[...]
    col = jax.lax.broadcasted_iota(jnp.int32, logits.shape, 1)
    logits = jnp.where(col < NUM_CLASSES, logits, NEG_INF)   # mask padded classes
    m = jnp.max(logits, axis=1, keepdims=True)
    lse = m + jnp.log(jnp.sum(jnp.exp(logits - m), axis=1, keepdims=True))
    labels = y_ref[...]                                      # (TB, 1) int32; -1 = padded row
    onehot = (col == labels) & (labels >= 0)
    # per-row negative log-likelihood; padded rows contribute exactly 0
    nll = -jnp.sum(jnp.where(onehot, logits - lse, 0.0), axis=1, keepdims=True)
    o_ref[...] = nll.astype(o_ref.dtype)                     # (TB, 1) store


# ------------------------- wrapper -------------------------

def prepare_params(w, b):
    """One-time layout plumbing: transpose W to (D, C_PAD) bf16 and lane-pad the bias.

    Call once and reuse the result; this keeps the padded-weight traffic out of every forward.
    """
    D = w.shape[1]
    w_t = jnp.zeros((D, C_PAD), jnp.bfloat16).at[:, :NUM_CLASSES].set(
        w.astype(jnp.bfloat16).T)
    b_p = jnp.zeros((1, C_PAD), jnp.float32).at[:, :NUM_CLASSES].set(
        b.astype(jnp.float32).reshape(1, NUM_CLASSES))
    return w_t, b_p


def torch_model_forward(x, w_t, b_p, y=None):
    """Mimics TorchModel.forward.

    x:   (B, D) float32 activations
    w_t: (D, C_PAD) bf16 pre-padded / transposed weight (from prepare_params)
    b_p: (1, C_PAD) float32 pre-padded bias (from prepare_params)
    y:   optional (B,) int32 labels -> scalar mean cross-entropy; else softmax probs (B, 5)
    """
    B, D = x.shape
    TB = _pick_tile(B, D)
    B_pad = _round_up(B, TB)
    num_tiles = B_pad // TB

    x_p = x.astype(jnp.bfloat16)              # bf16 HBM stream; f32 accumulation in-kernel
    if B_pad != B:
        x_p = jnp.pad(x_p, ((0, B_pad - B), (0, 0)))

    x_spec = pl.BlockSpec((TB, D), lambda i: (i, 0))
    w_spec = _resident_spec((D, C_PAD))
    b_spec = _resident_spec((1, C_PAD))
    params = pltpu.CompilerParams(
        dimension_semantics=("parallel",),
        vmem_limit_bytes=int(_vmem_capacity_bytes() * 0.9))

    if y is None:
        cost = pl.CostEstimate(
            flops=2 * B_pad * D * C_PAD,
            transcendentals=B_pad * C_PAD,
            bytes_accessed=(B_pad * D * 2 + D * C_PAD * 2 + C_PAD * 4
                            + B_pad * NUM_CLASSES * 4))
        probs = pl.pallas_call(
            _softmax_fwd_kernel,
            out_shape=jax.ShapeDtypeStruct((B_pad, NUM_CLASSES), jnp.float32),
            grid=(num_tiles,),
            in_specs=[x_spec, w_spec, b_spec],
            out_specs=pl.BlockSpec((TB, NUM_CLASSES), lambda i: (i, 0)),
            compiler_params=params,
            cost_estimate=cost,
        )(x_p, w_t, b_p)
        return probs if B_pad == B else probs[:B]
    else:
        y_p = y.astype(jnp.int32).reshape(B, 1)
        if B_pad != B:
            y_p = jnp.pad(y_p, ((0, B_pad - B), (0, 0)), constant_values=-1)
        cost = pl.CostEstimate(
            flops=2 * B_pad * D * C_PAD,
            transcendentals=2 * B_pad * C_PAD,
            bytes_accessed=(B_pad * D * 2 + D * C_PAD * 2 + C_PAD * 4
                            + B_pad * 4 + B_pad * 4))
        per_row = pl.pallas_call(
            _xent_loss_kernel,
            out_shape=jax.ShapeDtypeStruct((B_pad, 1), jnp.float32),
            grid=(num_tiles,),
            in_specs=[x_spec, w_spec, b_spec,
                      pl.BlockSpec((TB, 1), lambda i: (i, 0))],
            out_specs=pl.BlockSpec((TB, 1), lambda i: (i, 0)),
            compiler_params=params,
            cost_estimate=cost,
        )(x_p, w_t, b_p, y_p)
        return jnp.sum(per_row) / B           # mean over the real (unpadded) batch


# ------------------------- main -------------------------

if __name__ == "__main__":
    B = 16         # batch
    D = 32         # input_size

    key = jax.random.PRNGKey(0)
    kx, kw, kb, ky = jax.random.split(key, 4)

    # Deterministic parameter init (shapes per nn.Linear(input_size, 5)).
    bound = 1.0 / jnp.sqrt(jnp.float32(D))
    w = jax.random.uniform(kw, (NUM_CLASSES, D), jnp.float32, -bound, bound)
    b = jax.random.uniform(kb, (NUM_CLASSES,), jnp.float32, -bound, bound)

    x = jax.random.normal(kx, (B, D), jnp.float32)
    y = jax.random.randint(ky, (B,), 0, NUM_CLASSES, dtype=jnp.int32)

    # One-time weight layout prep (transpose + lane-pad), reused by both calls.
    w_t, b_p = prepare_params(w, b)

    # Inference path: softmax(linear(x), dim=1)
    probs = jax.block_until_ready(torch_model_forward(x, w_t, b_p))
    # Training path: cross_entropy(linear(x), y), reduction='mean'
    loss = jax.block_until_ready(torch_model_forward(x, w_t, b_p, y))

    # Pure-JAX f32 reference (same math as the PyTorch module).
    logits_ref = x @ w.T + b
    probs_ref = jax.nn.softmax(logits_ref, axis=1)
    logp_ref = jax.nn.log_softmax(logits_ref, axis=1)
    loss_ref = -jnp.mean(logp_ref[jnp.arange(B), y])

    assert probs.shape == (B, NUM_CLASSES)
    # Exact in-kernel normalization -> rows sum to 1 to fp precision.
    assert bool(jnp.all(jnp.abs(jnp.sum(probs, axis=1) - 1.0) < 1e-3))
    # bf16 input streams (f32 accumulation) -> small deviation vs the f32 reference.
    assert bool(jnp.allclose(probs, probs_ref, atol=2e-2))
    assert bool(jnp.isfinite(loss))
    assert bool(jnp.abs(loss - loss_ref) < 2e-2)

    print("KERNEL_OK")
</pallas_src>

<mosaic_0001>
module attributes {stable_mosaic.version = 11 : i64} {
  func.func @_softmax_fwd_kernel(%arg0: i32, %arg1: memref<8x32xbf16, #tpu.memory_space<vmem>>, %arg2: memref<32x128xbf16, #tpu.memory_space<vmem>>, %arg3: memref<1x128xf32, #tpu.memory_space<vmem>>, %arg4: memref<8x5xf32, #tpu.memory_space<vmem>>) attributes {dimension_semantics = [#tpu.dimension_semantics<parallel>], iteration_bounds = array<i64: 2>, scalar_prefetch = 0 : i64, scratch_operands = 0 : i64, tpu.core_type = #tpu.core_type<tc>, window_params = [{transform_indices = @transform_0, window_bounds = array<i64: 8, 32>}, {pipeline_mode = #tpu.pipeline_mode<synchronous>, transform_indices = @transform_1, window_bounds = array<i64: 32, 128>}, {pipeline_mode = #tpu.pipeline_mode<synchronous>, transform_indices = @transform_2, window_bounds = array<i64: 1, 128>}, {transform_indices = @transform_3, window_bounds = array<i64: 8, 5>}]} {
    %c0 = arith.constant 0 : index
    %c0_0 = arith.constant 0 : index
    %0 = vector.load %arg1[%c0, %c0_0] : memref<8x32xbf16, #tpu.memory_space<vmem>>, vector<8x32xbf16>
    %c0_1 = arith.constant 0 : index
    %c0_2 = arith.constant 0 : index
    %1 = vector.load %arg2[%c0_1, %c0_2] : memref<32x128xbf16, #tpu.memory_space<vmem>>, vector<32x128xbf16>
    %cst = arith.constant dense<0.000000e+00> : vector<8x128xf32>
    %2 = tpu.matmul %0, %1, %cst {dimension_numbers = #tpu.dot_dimension_numbers<[1], [0], [0], [1], [0, 0, 1, 1], [], []>} : vector<8x32xbf16>, vector<32x128xbf16>, vector<8x128xf32> -> vector<8x128xf32>
    %c0_3 = arith.constant 0 : index
    %c0_4 = arith.constant 0 : index
    %3 = vector.load %arg3[%c0_3, %c0_4] : memref<1x128xf32, #tpu.memory_space<vmem>>, vector<1x128xf32>
    %4 = vector.broadcast %3 : vector<1x128xf32> to vector<8x128xf32>
    %5 = arith.addf %2, %4 : vector<8x128xf32>
    %6 = tpu.iota {dimensions = array<i32: 1>} : vector<8x128xi32>
    %c5_i32 = arith.constant 5 : i32
    %7 = vector.broadcast %c5_i32 : i32 to vector<8x128xi32>
    %8 = arith.cmpi slt, %6, %7 : vector<8x128xi32>
    %cst_5 = arith.constant -1.000000e+30 : f32
    %9 = vector.broadcast %cst_5 : f32 to vector<8x128xf32>
    %10 = arith.select %8, %5, %9 : vector<8x128xi1>, vector<8x128xf32>
    %cst_6 = arith.constant dense<0xFF800000> : vector<8xf32>
    %11 = vector.multi_reduction <maximumf>, %10, %cst_6 [1] : vector<8x128xf32> to vector<8xf32>
    %12 = vector.shape_cast %11 : vector<8xf32> to vector<8x1xf32>
    %13 = vector.broadcast %12 : vector<8x1xf32> to vector<8x128xf32>
    %14 = arith.subf %10, %13 : vector<8x128xf32>
    %15 = math.exp %14 : vector<8x128xf32>
    %cst_7 = arith.constant dense<0.000000e+00> : vector<8xf32>
    %16 = vector.multi_reduction <add>, %15, %cst_7 [1] : vector<8x128xf32> to vector<8xf32>
    %17 = vector.shape_cast %16 : vector<8xf32> to vector<8x1xf32>
    %18 = vector.broadcast %17 : vector<8x1xf32> to vector<8x128xf32>
    %19 = arith.divf %15, %18 : vector<8x128xf32>
    %20 = vector.extract_strided_slice %19 {offsets = [0, 0], sizes = [8, 5], strides = [1, 1]} : vector<8x128xf32> to vector<8x5xf32>
    %c0_8 = arith.constant 0 : index
    %c0_9 = arith.constant 0 : index
    %21 = vector.load %arg4[%c0_8, %c0_9] : memref<8x5xf32, #tpu.memory_space<vmem>>, vector<8x5xf32>
    tpu.vector_store %arg4[%c0_8, %c0_9], %20 {strides = array<i32>} : memref<8x5xf32, #tpu.memory_space<vmem>>, vector<8x5xf32>,
    return
  }
  func.func @transform_0(%arg0: i32) -> (i32, i32) {
    %c0_i32 = arith.constant 0 : i32
    %c0_i32_0 = arith.constant 0 : i32
    return %arg0, %c0_i32 : i32, i32
  }
  func.func @transform_1(%arg0: i32) -> (i32, i32) {
    %c0_i32 = arith.constant 0 : i32
    %c0_i32_0 = arith.constant 0 : i32
    %c0_i32_1 = arith.constant 0 : i32
    return %c0_i32, %c0_i32_0 : i32, i32
  }
  func.func @transform_2(%arg0: i32) -> (i32, i32) {
    %c0_i32 = arith.constant 0 : i32
    %c0_i32_0 = arith.constant 0 : i32
    %c0_i32_1 = arith.constant 0 : i32
    return %c0_i32, %c0_i32_0 : i32, i32
  }
  func.func @transform_3(%arg0: i32) -> (i32, i32) {
    %c0_i32 = arith.constant 0 : i32
    %c0_i32_0 = arith.constant 0 : i32
    return %arg0, %c0_i32 : i32, i32
  }
}

</mosaic_0001>

<bundles_post_ra>
// kernel: tpu_custom_call.1
= control target key start
LH: loop header
LB: loop body
LE: loop exit
PB: predicated region body
PF: predicated region fallthrough
CT: control target
= control target key end

     0   :  { %8 = vsyncpa [#allocation3], 0  ;;  %s656_s0 = inlined_call_operand.hbm [shape: bf16[16,32], index: 0, kind: input, shape index: {}]   ;;  %s657_s1 = inlined_call_operand.hbm [shape: bf16[32,128], index: 1, kind: input, shape index: {}]   ;;  %s658_s2 = inlined_call_operand.vmem [shape: f32[1,128], index: 2, kind: input, shape index: {}]   ;;  %s659_s3 = inlined_call_operand.vmem [shape: f32[16,5], index: 3, kind: output, shape index: {}]  }
   0x1   :  { %10 = vsyncpa [#allocation3 + $0x1], 0 }
   0x2   :  { %11 = vsyncpa [#allocation5], 0  ;;  %s550_s12 = smov 0   ;;  %s552_s13 = smov 0  }
   0x3   :  { %s554_s14 = smov 0   ;;  %s556_s15 = smov 0  }
   0x4 LB: > { %s127_s18 = sshll.u32 %s657_s1, 4  ;;  %s572_s19 = sadd.s32 4294967295, %s525_s15   ;;  %s525_s15 = sphi %s556_s15, %s666_s15   ;;  %s521_s14 = sphi %s554_s14, %s665_s14   ;;  %s517_s13 = sphi %s552_s13, %s664_s13   ;;  %s513_s12 = sphi %s550_s12, %s663_s12   ;;  %s128_s18 = int_to_ptr.hbm [resolvable:$true] %s127_s18 }
   0x5   : > { %p348_p0 = scmp.ge.s32.totalorder %s525_s15, 1  ;;  %p38_p1 = scmp.eq.s32.totalorder %s572_s19, 0 }
   0x6   : > { %p116_p2 = scmp.lt.s32.totalorder %s525_s15, 3  ;;  %s527_s21 = smov [#allocation4]  }
   0x7   : > { %s129_s22 = sshll.u32 %s527_s21, 4  ;;  %s528_s23 = smov 64   ;;  %s130_s22 = int_to_ptr.vmem [resolvable:$true] %s129_s22 }
   0x8   : > { %p577_p3 = pnand %p348_p0, %p116_p2  ;;  %s529_s24 = smov 4  }
   0x9   : > { %s586_s25 = sadd.s32 1, %s525_s15   ;;  %s24_s27 = sadd.s32 1, %s521_s14 }
   0xa   : > { %p376_p4 = pneg %p577_p3  ;;  %s21_s26 = ssub.s32 %s525_s15, %s586_s25 }
   0xb   : > { %p22_p6 = scmp.eq.s32.totalorder %s21_s26, 0  ;;  %p31_p7 = scmp.ne.s32.totalorder %s521_s14, %s517_s13 }
   0xc   : > { %p377_p5 = pnand %p376_p4, %p38_p1  ;;  %p32_p8 = scmp.eq.s32.totalorder %s525_s15, 0 }
   0xd   : > { %p37_p9 = scmp.ne.s32.totalorder %s517_s13, %s513_s12  ;;  %p385_p12 = scmp.lt.s32.totalorder %s525_s15, 2 }
   0xe   : > { %379 = dma.hbm_to_vmem [thread:$0]  (!%p377_p5), %s128_s18, 256, %s130_s22, [#allocation5], %s528_s23, %s528_s23, %s529_s24  }
   0xf   : > { %s596_s28 = scalar_select %p22_p6, %s521_s14, %s24_s27  }
  0x10   : > { %p33_p10 = por %p32_p8, %p31_p7  ;;  %p600_p11 = por %p38_p1, %p37_p9 }
  0x11   : > { %s146_s30 = sand.u32 1, %s521_s14   ;;  %s352_s5 = sshll.u32 %s525_s15, 2 }
  0x12   : > { %s351_s4 = sshll.u32 %s146_s30, 2  ;;  %s154_s8 = scalar_lea.hbm %s656_s0, %s352_s5 }
  0x13   : > { %s150_s9 = scalar_lea.vmem [#allocation2], %s351_s4  ;;  %s156_s11 = sshll.u32 %s154_s8, 4  ;;  %s157_s11 = int_to_ptr.hbm [resolvable:$true] %s156_s11 }
  0x14   : > { %s158_s10 = sshll.u32 %s150_s9, 4  ;;  %p610_p13 = pnand %p385_p12, %p33_p10  ;;  %s159_s10 = int_to_ptr.vmem [resolvable:$true] %s158_s10 }
  0x15   : > { %s147_s16 = scalar_lea.sflag [#allocation3], %s146_s30  ;;  %s457_s17 = sshra.s32 %s157_s11, 4  ;;  %s458_s17 = int_to_ptr.hbm [resolvable:$true] %s457_s17 }
  0x16   : > { %s459_s18 = scalar_lea.hbm %s458_s17, 4  ;;  %p461_p2 = pneg %p610_p13 }
  0x17   : > { %p460_p0 = scmp.ne.s32.totalorder %s458_s17, %s459_s18  ;;  %s464_s22 = scalar_lea.hbm %s656_s0, 8 }
  0x18   : > { %p465_p6 = scmp.lt.s32.totalorder %s458_s17, %s656_s0  ;;  %p466_p7 = scmp.lt.s32.totalorder %s464_s22, %s459_s18 }
  0x19   : > { %p462_p4 = pnand %p461_p2, %p460_p0 }
  0x1a   : > { %p467_p8 = por %p466_p7, %p465_p6 }
  0x1b   : > { %p463_p5 = pneg %p462_p4 }
  0x1d   : > { %p468_p9 = pnand %p467_p8, %p463_p5 }
  0x1f   : > { %471 = shalt.err (!%p468_p9)
}
  0x20   : > { %383 = dma.hbm_to_vmem [thread:$0]  (!%p610_p13), %s157_s11, 64, %s159_s10, %s147_s16  }
  0x21   : > { %167 = sbr.rel (%p577_p3) target bundleno = 441 (0x1b9), region = 32  ;;  %s169_s26 = sand.u32 (!%p577_p3), 1, %s517_s13  }
  0x22   : > { %s354_s27 = sshll.u32 (!%p577_p3), %s169_s26, 2  ;;  %s170_s30 = scalar_lea.sflag (!%p577_p3), [#allocation3], %s169_s26 }
  0x23   : > { %s173_s4 = scalar_lea.vmem (!%p577_p3), [#allocation2], %s354_s27 }
  0x26   : > { %504 = dma.done.wait (%p600_p11), %s170_s30, 64  }
  0x27   : > { %506 = vsyncadd (%p600_p11), %s170_s30, 4294967232 }
  0x28   : > { %508 = dma.done.wait (%p38_p1), [#allocation5], 256  }
  0x29   : > { %510 = vsyncadd (%p38_p1), [#allocation5], 4294967040  ;;  %v369_v0 = vld [vmem:[#allocation4 + $0x8] sm:$0xff]  ;;  %v368_v1 = vld [vmem:[#allocation4] sm:$0xff]  ;;  %vm227_vm0 = vcmask 261120   ;;  %v244_v3 = vlaneseq  ;;  %p201_p1 = scmp.lt.s32.totalorder %s572_s19, 1 }
  0x2a   : > { %237 = vmatpush.bf16.msra.mxu0 %v369_v0  ;;  %v206_v2 = vld [vmem:[%s173_s4] sm:$0xf]  ;;  %vm270_vm6 = vcmask 39936  }
  0x2b   : > { %v245_v4 = vand.u32 127, %v244_v3  ;;  %v422_v5 = vld [vmem:[%s658_s2] ss:$0 sm:$0xff]  ;;  %s668_s19 = smov (!%p201_p1, %s572_s19), 1 }
  0x2c   : > { %s356_s29 = sshll.u32 %s668_s19, 3 }
  0x2d   : > { %vm246_vm1 = vcmp.lt.s32.totalorder %v245_v4, 5  ;;  %s204_s8 = scalar_lea.vmem %s659_s3, %s356_s29 }
  0x2e   : > { %238 = vmatpush.bf16.msra.mxu0 %v368_v1 }
  0x31   : > { %365 = vmatmul.msk.bf16.vlgmr.msra.gmra.mxu0 %vm227_vm0, %v206_v2 }
  0xae   : > { %v240_v6 = vpop.f32.mrf.mxu0 }
  0xaf   : > { %v241_v7 = vadd.f32 %v422_v5, %v240_v6 }
  0xb1   : > { %v247_v8 = vsel %vm246_vm1, %v241_v7, -1e+30 }
  0xb2   : > { %248 = vmax.xlane.f32.xlu0 %v247_v8 }
  0xb6   : > { %v242_v9 = vpop.f32.mrf.mxu0 }
 0x125   : > { %v249_v10 = vpop.xlane.xlu0 %248 }
 0x126   : > { %v250_v11 = vsub.f32 %v247_v8, %v249_v10 }
 0x128   : > { %v251_v12 = vmul.f32 1.442695, %v250_v11 }
 0x12a   : > { %423 = vpow2.f32 %v251_v12 }
 0x130   : > { %v424_v13 = vpop.eup %423 }
 0x131   : > { %253 = vadd.xlane.f32.xlu0 %v424_v13 }
 0x1a4   : > { %v254_v14 = vpop.xlane.xlu0 %253 }
 0x1a5   : > { %425 = vrcp.f32 %v254_v14  ;;  %v266_v18 = vand.u32 2147483648, %v254_v14  ;;  %v264_v20 = vand.u32 2147483647, %v254_v14  ;;  %vm260_vm3 = vweird.f32 %v254_v14 }
 0x1a7   : > { %v267_v22 = vor.u32 1.1754944e-38, %v266_v18  ;;  %vm265_vm5 = vcmp.eq.f32.partialorder %v264_v20, 8.507059e+37 }
 0x1ab   : > { %v426_v15 = vpop.eup %425 }
 0x1ac   : > { %v256_v16 = vmul.f32 %v426_v15, %v254_v14  ;;  %vm261_vm2 = vweird.f32 %v426_v15 }
 0x1ad   : > { %vm262_vm4 = vmor %vm260_vm3, %vm261_vm2 }
 0x1ae   : > { %v257_v17 = vsub.f32 1.0, %v256_v16 }
 0x1b0   : > { %v258_v19 = vmul.f32 %v426_v15, %v257_v17 }
 0x1b2   : > { %v259_v21 = vadd.f32 %v426_v15, %v258_v19 }
 0x1b4   : > { %v263_v23 = vsel %vm262_vm4, %v426_v15, %v259_v21 }
 0x1b5   : > { %v268_v24 = vsel %vm265_vm5, %v267_v22, %v263_v23 }
 0x1b6   : > { %v269_v25 = vmul.f32 %v424_v13, %v268_v24 }
 0x1b8   : > { %271 = vst.msk [vmem:[%s204_s8] sm:$0xff] %vm270_vm6, %v269_v25 }
 0x1b9 PF: > { %p14_p3 = scmp.ge.s32.totalorder %s586_s25, 4   ;;  %s663_s12 = smov %s517_s13 }
 0x1ba   : > { %s664_s13 = smov %s521_s14  ;;  %s665_s14 = smov %s596_s28 }
 0x1bb   : > { %s666_s15 = smov %s586_s25  ;;  %16 = sbr.rel (!%p14_p3) target bundleno = 4 (0x4), region = 76 }
 0x1c0   :  { %291 = vsyncpa [#allocation3], 1 }
 0x1c1   :  { %293 = vsyncpa [#allocation3 + $0x1], 1 }
 0x1c2   :  { %294 = vsyncpa [#allocation5], 1 }

</bundles_post_ra>
